<compile_context>
chip_gen: v7x
topology: tpu7x:2x2x1
jax: 0.10.0
libtpu: 0.0.40
codegen_flags: <defaults>
</compile_context>

<pallas_src>
import functools

import jax
import jax.numpy as jnp
from jax.experimental import pallas as pl
from jax.experimental.pallas import tpu as pltpu


def _num_parallel_tiles():
    """1 grid step on single-TensorCore chips (v2..v6e), 2 on v7x (2 TCs/chip)."""
    try:
        kind = jax.devices()[0].device_kind.lower()
    except Exception:
        return 1
    return 2 if ("v7" in kind or "tpu7" in kind) else 1


def textnn_fold_params(w1, b1, running_mean, running_var, w2, *, eps=1e-5):
    """One-time (load-time) parameter preparation -- OUT of the hot path.

    Folds eval-mode BatchNorm1d(affine=False) into Linear1 (exact rewrite):
        ((x @ W1 + b1) - mean) * inv_std == x @ (W1 * inv_std) + (b1 - mean) * inv_std
    and casts weights to bfloat16 for the MXU.

    w1: [Din, Din] pre-transposed (in, out); b1/mean/var: [Din];
    w2: [Din, Dout] pre-transposed (in, out).
    """
    inv_std = jax.lax.rsqrt(running_var.astype(jnp.float32) + eps)
    w1_fold = (w1.astype(jnp.float32) * inv_std[None, :]).astype(jnp.bfloat16)
    b1_fold = ((b1 - running_mean).astype(jnp.float32) * inv_std).reshape(1, -1)
    w2_bf = w2.astype(jnp.bfloat16)
    return w1_fold, b1_fold, w2_bf


def textnn_kernel(x_ref, w1_ref, b1_ref, w2_ref, o_ref):
    # Cast the x tile to bf16 on the VPU (free under MXU slack) -- avoids a
    # separate wrapper-side cast op and re-reading a bf16 copy from HBM.
    x = x_ref[...].astype(jnp.bfloat16)
    # Linear1 (+ folded BatchNorm): [TB, Din] @ [Din, Din] on the MXU, f32 accum.
    h = jnp.dot(x, w1_ref[...], preferred_element_type=jnp.float32)
    h = h + b1_ref[...]                       # folded (b1 - mean) * inv_std, f32
    # Dropout(0.5) in eval mode: identity.
    # Linear2 (no bias): intermediate rounded to bf16 for the MXU, f32 accum.
    o_ref[...] = jnp.dot(h.astype(jnp.bfloat16), w2_ref[...],
                         preferred_element_type=jnp.float32).astype(o_ref.dtype)


def textnn_forward(x, w1_fold, b1_fold, w2_bf, *, out_dtype=jnp.bfloat16,
                   num_tiles=None):
    """x: [B, Din] f32; pre-folded params from textnn_fold_params."""
    B, Din = x.shape
    Dout = w2_bf.shape[1]

    if num_tiles is None:
        num_tiles = _num_parallel_tiles()
    num_tiles = max(1, min(int(num_tiles), pl.cdiv(B, 8)))

    # Sublane-aligned row tile; pad ragged batches and slice afterwards.
    tile_b = pl.cdiv(pl.cdiv(B, num_tiles), 8) * 8
    b_pad = tile_b * num_tiles
    x_in = x if b_pad == B else jnp.pad(x, ((0, b_pad - B), (0, 0)))

    flops = 2 * b_pad * Din * (Din + Dout)
    bytes_accessed = (x_in.size * x_in.dtype.itemsize
                      + w1_fold.size * w1_fold.dtype.itemsize
                      + b1_fold.size * b1_fold.dtype.itemsize
                      + w2_bf.size * w2_bf.dtype.itemsize
                      + b_pad * Dout * jnp.dtype(out_dtype).itemsize)

    # NOTE: W1/W2 are grid-invariant resident blocks. At Din=128 their VMEM
    # footprint is negligible; if Din/Dout grow (v7x has only 64 MiB VMEM),
    # shorten their buffering / tile the contraction dims and raise
    # vmem_limit_bytes explicitly.
    out = pl.pallas_call(
        textnn_kernel,
        out_shape=jax.ShapeDtypeStruct((b_pad, Dout), out_dtype),
        grid_spec=pl.GridSpec(
            grid=(num_tiles,),
            in_specs=[
                pl.BlockSpec((tile_b, Din), lambda i: (i, 0)),   # x tile (f32)
                pl.BlockSpec((Din, Din), lambda i: (0, 0)),      # folded W1 (bf16)
                pl.BlockSpec((1, Din), lambda i: (0, 0)),        # folded bias (f32)
                pl.BlockSpec((Din, Dout), lambda i: (0, 0)),     # W2 (bf16)
            ],
            out_specs=pl.BlockSpec((tile_b, Dout), lambda i: (i, 0)),
        ),
        compiler_params=pltpu.CompilerParams(
            dimension_semantics=("parallel",),
        ),
        cost_estimate=pl.CostEstimate(
            flops=flops, transcendentals=0, bytes_accessed=bytes_accessed),
    )(x_in, w1_fold, b1_fold, w2_bf)

    return out if b_pad == B else out[:B]


def textnn_ref(x, w1, b1, running_mean, running_var, w2, *, eps=1e-5):
    h = x @ w1 + b1
    hn = (h - running_mean) * jax.lax.rsqrt(running_var + eps)
    return hn @ w2   # Dropout eval-mode = identity


if __name__ == "__main__":
    # Shapes consistent with TextNN (input_dim -> input_dim -> output_dim),
    # scaled down from (1024 -> 2048) but keeping lane-dense multiples of 128.
    B, D_IN, D_OUT = 256, 128, 256

    key = jax.random.PRNGKey(0)
    kx, kw1, kb1, km, kv, kw2 = jax.random.split(key, 6)

    x = jax.random.normal(kx, (B, D_IN), dtype=jnp.float32)

    # Synthetic parameters (nn.Linear / BatchNorm1d running stats), weights
    # pre-transposed to [in, out] layout.
    w1 = jax.random.normal(kw1, (D_IN, D_IN), dtype=jnp.float32) * 0.02
    b1 = jax.random.normal(kb1, (D_IN,), dtype=jnp.float32) * 0.02
    running_mean = jax.random.normal(km, (D_IN,), dtype=jnp.float32) * 0.1
    running_var = jax.random.uniform(kv, (D_IN,), dtype=jnp.float32,
                                     minval=0.5, maxval=1.5)
    w2 = jax.random.normal(kw2, (D_IN, D_OUT), dtype=jnp.float32) * 0.02

    # One-time BN fold + bf16 casts (load time, not the per-forward hot path).
    w1_fold, b1_fold, w2_bf = jax.block_until_ready(
        textnn_fold_params(w1, b1, running_mean, running_var, w2))

    fwd = jax.jit(functools.partial(textnn_forward,
                                    num_tiles=_num_parallel_tiles()))
    out = jax.block_until_ready(fwd(x, w1_fold, b1_fold, w2_bf))

    ref = textnn_ref(x, w1, b1, running_mean, running_var, w2)
    assert out.shape == (B, D_OUT)
    # bf16 operands/intermediate/output with f32 MXU accumulation -> relaxed
    # tolerance vs the f32 reference (documented precision tradeoff).
    assert jnp.allclose(out.astype(jnp.float32), ref, atol=3e-2, rtol=3e-2), \
        "mismatch vs reference"

    print("KERNEL_OK")
</pallas_src>

<mosaic_0001>
module attributes {stable_mosaic.version = 11 : i64} {
  func.func @textnn_kernel(%arg0: i32, %arg1: memref<256x128xf32, #tpu.memory_space<vmem>>, %arg2: memref<128x128xbf16, #tpu.memory_space<vmem>>, %arg3: memref<1x128xf32, #tpu.memory_space<vmem>>, %arg4: memref<128x256xbf16, #tpu.memory_space<vmem>>, %arg5: memref<256x256xbf16, #tpu.memory_space<vmem>>) attributes {dimension_semantics = [#tpu.dimension_semantics<parallel>], iteration_bounds = array<i64: 1>, scalar_prefetch = 0 : i64, scratch_operands = 0 : i64, tpu.core_type = #tpu.core_type<tc>, window_params = [{transform_indices = @transform_0, window_bounds = array<i64: 256, 128>}, {pipeline_mode = #tpu.pipeline_mode<synchronous>, transform_indices = @transform_1, window_bounds = array<i64: 128, 128>}, {pipeline_mode = #tpu.pipeline_mode<synchronous>, transform_indices = @transform_2, window_bounds = array<i64: 1, 128>}, {pipeline_mode = #tpu.pipeline_mode<synchronous>, transform_indices = @transform_3, window_bounds = array<i64: 128, 256>}, {transform_indices = @transform_4, window_bounds = array<i64: 256, 256>}]} {
    %c0 = arith.constant 0 : index
    %c0_0 = arith.constant 0 : index
    %0 = vector.load %arg1[%c0, %c0_0] : memref<256x128xf32, #tpu.memory_space<vmem>>, vector<256x128xf32>
    %1 = arith.truncf %0 : vector<256x128xf32> to vector<256x128xbf16>
    %c0_1 = arith.constant 0 : index
    %c0_2 = arith.constant 0 : index
    %2 = vector.load %arg2[%c0_1, %c0_2] : memref<128x128xbf16, #tpu.memory_space<vmem>>, vector<128x128xbf16>
    %cst = arith.constant dense<0.000000e+00> : vector<256x128xf32>
    %3 = tpu.matmul %1, %2, %cst {dimension_numbers = #tpu.dot_dimension_numbers<[1], [0], [0], [1], [0, 0, 1, 1], [], []>} : vector<256x128xbf16>, vector<128x128xbf16>, vector<256x128xf32> -> vector<256x128xf32>
    %c0_3 = arith.constant 0 : index
    %c0_4 = arith.constant 0 : index
    %4 = vector.load %arg3[%c0_3, %c0_4] : memref<1x128xf32, #tpu.memory_space<vmem>>, vector<1x128xf32>
    %5 = vector.broadcast %4 : vector<1x128xf32> to vector<256x128xf32>
    %6 = arith.addf %3, %5 : vector<256x128xf32>
    %7 = arith.truncf %6 : vector<256x128xf32> to vector<256x128xbf16>
    %c0_5 = arith.constant 0 : index
    %c0_6 = arith.constant 0 : index
    %8 = vector.load %arg4[%c0_5, %c0_6] : memref<128x256xbf16, #tpu.memory_space<vmem>>, vector<128x256xbf16>
    %cst_7 = arith.constant dense<0.000000e+00> : vector<256x256xf32>
    %9 = tpu.matmul %7, %8, %cst_7 {dimension_numbers = #tpu.dot_dimension_numbers<[1], [0], [0], [1], [0, 0, 1, 1], [], []>} : vector<256x128xbf16>, vector<128x256xbf16>, vector<256x256xf32> -> vector<256x256xf32>
    %10 = arith.truncf %9 : vector<256x256xf32> to vector<256x256xbf16>
    %c0_8 = arith.constant 0 : index
    %c0_9 = arith.constant 0 : index
    %11 = vector.load %arg5[%c0_8, %c0_9] : memref<256x256xbf16, #tpu.memory_space<vmem>>, vector<256x256xbf16>
    tpu.vector_store %arg5[%c0_8, %c0_9], %10 {strides = array<i32>} : memref<256x256xbf16, #tpu.memory_space<vmem>>, vector<256x256xbf16>,
    return
  }
  func.func @transform_0(%arg0: i32) -> (i32, i32) {
    %c0_i32 = arith.constant 0 : i32
    %c0_i32_0 = arith.constant 0 : i32
    return %arg0, %c0_i32 : i32, i32
  }
  func.func @transform_1(%arg0: i32) -> (i32, i32) {
    %c0_i32 = arith.constant 0 : i32
    %c0_i32_0 = arith.constant 0 : i32
    %c0_i32_1 = arith.constant 0 : i32
    return %c0_i32, %c0_i32_0 : i32, i32
  }
  func.func @transform_2(%arg0: i32) -> (i32, i32) {
    %c0_i32 = arith.constant 0 : i32
    %c0_i32_0 = arith.constant 0 : i32
    %c0_i32_1 = arith.constant 0 : i32
    return %c0_i32, %c0_i32_0 : i32, i32
  }
  func.func @transform_3(%arg0: i32) -> (i32, i32) {
    %c0_i32 = arith.constant 0 : i32
    %c0_i32_0 = arith.constant 0 : i32
    %c0_i32_1 = arith.constant 0 : i32
    return %c0_i32, %c0_i32_0 : i32, i32
  }
  func.func @transform_4(%arg0: i32) -> (i32, i32) {
    %c0_i32 = arith.constant 0 : i32
    %c0_i32_0 = arith.constant 0 : i32
    return %arg0, %c0_i32 : i32, i32
  }
}

</mosaic_0001>

<bundles_post_ra>
// kernel: textnn_forward.1
= control target key start
LH: loop header
LB: loop body
LE: loop exit
PB: predicated region body
PF: predicated region fallthrough
CT: control target
= control target key end

     0   :  { %9 = vsyncpa [#allocation3], 0  ;;  %s1343_s0 = inlined_call_operand.hbm [shape: f32[256,128], index: 0, kind: input, shape index: {}]   ;;  %s1344_s1 = inlined_call_operand.hbm [shape: bf16[128,128], index: 1, kind: input, shape index: {}]   ;;  %s1345_s2 = inlined_call_operand.vmem [shape: f32[1,128], index: 2, kind: input, shape index: {}]   ;;  %s1346_s3 = inlined_call_operand.hbm [shape: bf16[128,256], index: 3, kind: input, shape index: {}]   ;;  %s1347_s4 = inlined_call_operand.hbm [shape: bf16[256,256], index: 4, kind: output, shape index: {}]  }
   0x1   :  { %10 = vsyncpa [#allocation6], 0 }
   0x2   :  { %11 = vsyncpa [#allocation4], 0  ;;  %s1199_s15 = smov [#allocation5]   ;;  %s1105_s19 = scalar_lea.hbm %s1344_s1, 1024 }
   0x3   :  { %s29_s16 = sshll.u32 %s1199_s15, 4  ;;  %p1106_p0 = scmp.ne.s32.totalorder %s1344_s1, %s1105_s19  ;;  %s30_s16 = int_to_ptr.vmem [resolvable:$true] %s29_s16 }
   0x4   :  { %p1109_p1 = scmp.lt.u32.totalorder %s1105_s19, %s1344_s1 }
   0x6   :  { %p1111_p2 = pnand %p1109_p1, %p1106_p0 }
   0x8   :  { %1114 = shalt.err (!%p1111_p2)
}
   0x9   :  { %s1115_s24 = scalar_lea.vmem %s30_s16, 1024  ;;  %p1120_p4 = scmp.lt.s32.totalorder %s30_s16, %s30_s16 }
   0xa   :  { %p1116_p3 = scmp.ne.s32.totalorder %s30_s16, %s1115_s24  ;;  %p1121_p5 = scmp.lt.s32.totalorder %s1115_s24, %s1115_s24 }
   0xc   :  { %p1122_p6 = por %p1121_p5, %p1120_p4 }
   0xe   :  { %p1123_p7 = pnand %p1122_p6, %p1116_p3 }
  0x10   :  { %1126 = shalt.err (!%p1123_p7)
}
  0x11   :  { %s1200_s25 = smov 64   ;;  %s1201_s26 = smov 4  }
  0x12   :  { %35 = dma.hbm_to_vmem [thread:$0]  %s1344_s1, 1024, %s30_s16, [#allocation6], %s1200_s25, %s1200_s25, %s1201_s26  }
  0x13   :  { %s1202_s29 = smov [#allocation2]   ;;  %s1127_s7 = scalar_lea.hbm %s1343_s0, 4096 }
  0x14   :  { %s17_s30 = sshll.u32 %s1202_s29, 4  ;;  %p1128_p8 = scmp.ne.s32.totalorder %s1343_s0, %s1127_s7  ;;  %s18_s30 = int_to_ptr.vmem [resolvable:$true] %s17_s30 }
  0x15   :  { %p1131_p9 = scmp.lt.u32.totalorder %s1127_s7, %s1343_s0 }
  0x17   :  { %p1133_p10 = pnand %p1131_p9, %p1128_p8 }
  0x19   :  { %1136 = shalt.err (!%p1133_p10)
}
  0x1a   :  { %s1137_s12 = scalar_lea.vmem %s18_s30, 4096  ;;  %p1142_p12 = scmp.lt.s32.totalorder %s18_s30, %s18_s30 }
  0x1b   :  { %p1138_p11 = scmp.ne.s32.totalorder %s18_s30, %s1137_s12  ;;  %p1143_p13 = scmp.lt.s32.totalorder %s1137_s12, %s1137_s12 }
  0x1d   :  { %p1144_p0 = por %p1143_p13, %p1142_p12 }
  0x1f   :  { %p1145_p1 = pnand %p1144_p0, %p1138_p11 }
  0x21   :  { %1148 = shalt.err (!%p1145_p1)
}
  0x22   :  { %s1203_s1 = smov 128   ;;  %s1204_s13 = smov 8  }
  0x23   :  { %23 = dma.hbm_to_vmem [thread:$0]  %s1343_s0, 4096, %s18_s30, [#allocation3], %s1203_s1, %s1203_s1, %s1204_s13  }
  0x24   :  { %s1205_s16 = smov [#allocation7]   ;;  %s1149_s20 = scalar_lea.hbm %s1346_s3, 2048 }
  0x25   :  { %s43_s17 = sshll.u32 %s1205_s16, 4  ;;  %p1150_p2 = scmp.ne.s32.totalorder %s1346_s3, %s1149_s20  ;;  %s44_s17 = int_to_ptr.vmem [resolvable:$true] %s43_s17 }
  0x26   :  { %p1153_p3 = scmp.lt.u32.totalorder %s1149_s20, %s1346_s3 }
  0x28   :  { %p1155_p4 = pnand %p1153_p3, %p1150_p2 }
  0x2a   :  { %1158 = shalt.err (!%p1155_p4)
}
  0x2b   :  { %s1159_s25 = scalar_lea.vmem %s44_s17, 2048  ;;  %p1164_p6 = scmp.lt.s32.totalorder %s44_s17, %s44_s17 }
  0x2c   :  { %p1160_p5 = scmp.ne.s32.totalorder %s44_s17, %s1159_s25  ;;  %p1165_p7 = scmp.lt.s32.totalorder %s1159_s25, %s1159_s25 }
  0x2e   :  { %p1166_p8 = por %p1165_p7, %p1164_p6 }
  0x30   :  { %p1167_p9 = pnand %p1166_p8, %p1160_p5 }
  0x32   :  { %1170 = shalt.err (!%p1167_p9)
}
  0x33   :  { %49 = dma.hbm_to_vmem [thread:$0]  %s1346_s3, 2048, %s44_s17, [#allocation6], %s1203_s1, %s1203_s1, %s1204_s13  }
  0x34   :  { %1193 = dma.done.wait [#allocation3], 4096  }
  0x35   :  { %1194 = vsyncadd [#allocation3], 4294963200 }
  0x36   :  { %1195 = dma.done.wait [#allocation6], 3072  }
  0x37   :  { %1196 = vsyncadd [#allocation6], 4294964224  ;;  %v1073_v0 = vld [vmem:[#allocation5] sm:$0xff]   ;;  %v1074_v1 = vld [vmem:[#allocation5 + $0x8] sm:$0xff]  }
  0x38   :  { %1000 = vmatprep.subr.bf16.mxu0 %v1073_v0  ;;  %v1075_v2 = vld [vmem:[#allocation5 + $0x10] sm:$0xff]   ;;  %v1076_v3 = vld [vmem:[#allocation5 + $0x18] sm:$0xff]   ;;  %v60_v4 = vld [vmem:[#allocation2] sm:$0xff] }
  0x39   :  { %1001 = vmatpush3.bf16.msra.mxu0 %v1073_v0  ;;  %v61_v5 = vld [vmem:[#allocation2 + $0x8] sm:$0xff]  ;;  %v1077_v7 = vld [vmem:[#allocation5 + $0x20] sm:$0xff]   ;;  %v1079_v9 = vld [vmem:[#allocation5 + $0x30] sm:$0xff]  }
  0x3a   :  { %1002 = vmatprep.subr.bf16.mxu0 %v1074_v1  ;;  %v92_v6 = vpack.c.bf16 %v61_v5, %v60_v4  ;;  %v1078_v8 = vld [vmem:[#allocation5 + $0x28] sm:$0xff]   ;;  %v1086_v12 = vld [vmem:[#allocation7 + $0x14] ss:$8 sps:$4 sm:$0xff]   ;;  %v1084_v14 = vld [vmem:[#allocation7 + $0x10] ss:$8 sps:$4 sm:$0xff]  }
  0x3b   :  { %v1083_v10 = vld [vmem:[#allocation7 + $0x4] ss:$8 sps:$4 sm:$0xff]   ;;  %v1081_v11 = vld [vmem:[#allocation7] ss:$8 sps:$4 sm:$0xff]   ;;  %v1080_v13 = vld [vmem:[#allocation5 + $0x38] sm:$0xff]  }
  0x3c   :  { %1016 = vmatprep.mubr.bf16.mxu0 %v92_v6  ;;  %1048 = vmatprep.subr.bf16.mxu1 %v1083_v10  ;;  %v1089_v15 = vld [vmem:[#allocation7 + $0x24] ss:$8 sps:$4 sm:$0xff]   ;;  %v62_v16 = vld [vmem:[#allocation2 + $0x10] sm:$0xff]  ;;  %v63_v17 = vld [vmem:[#allocation2 + $0x18] sm:$0xff] }
  0x3d   :  { %1003 = vmatpush3.bf16.msra.mxu0 %v1074_v1  ;;  %1056 = vmatpush1.bf16.msra.mxu1 %v1081_v11  ;;  %v64_v18 = vld [vmem:[#allocation2 + $0x20] sm:$0xff]  ;;  %v65_v19 = vld [vmem:[#allocation2 + $0x28] sm:$0xff]  ;;  %v1092_v21 = vld [vmem:[#allocation7 + $0x34] ss:$8 sps:$4 sm:$0xff]   ;;  %v93_v22 = vpack.c.bf16 %v63_v17, %v62_v16 }
  0x3e   :  { %1004 = vmatprep.subr.bf16.mxu0 %v1075_v2  ;;  %1049 = vmatprep.subr.bf16.mxu1 %v1086_v12  ;;  %v1087_v20 = vld [vmem:[#allocation7 + $0x20] ss:$8 sps:$4 sm:$0xff]   ;;  %v94_v23 = vpack.c.bf16 %v65_v19, %v64_v18  ;;  %v1090_v24 = vld [vmem:[#allocation7 + $0x30] ss:$8 sps:$4 sm:$0xff]   ;;  %v1095_v25 = vld [vmem:[#allocation7 + $0x44] ss:$8 sps:$4 sm:$0xff]  }
  0x3f   :  { %v66_v26 = vld [vmem:[#allocation2 + $0x30] sm:$0xff]  ;;  %v67_v27 = vld [vmem:[#allocation2 + $0x38] sm:$0xff]  ;;  %v68_v28 = vld [vmem:[#allocation2 + $0x40] sm:$0xff] }
  0x40   :  { %v69_v29 = vld [vmem:[#allocation2 + $0x48] sm:$0xff]  ;;  %v1098_v31 = vld [vmem:[#allocation7 + $0x54] ss:$8 sps:$4 sm:$0xff]   ;;  %v95_v32 = vpack.c.bf16 %v67_v27, %v66_v26  ;;  %v1096_v34 = vld [vmem:[#allocation7 + $0x50] ss:$8 sps:$4 sm:$0xff]  }
  0x41   :  { %1005 = vmatpush3.bf16.msra.mxu0 %v1075_v2  ;;  %1057 = vmatpush1.bf16.msra.mxu1 %v1084_v14  ;;  %v1093_v30 = vld [vmem:[#allocation7 + $0x40] ss:$8 sps:$4 sm:$0xff]   ;;  %v96_v33 = vpack.c.bf16 %v69_v29, %v68_v28  ;;  %v70_v35 = vld [vmem:[#allocation2 + $0x50] sm:$0xff]  ;;  %v71_v36 = vld [vmem:[#allocation2 + $0x58] sm:$0xff] }
  0x42   :  { %1006 = vmatprep.subr.bf16.mxu0 %v1076_v3  ;;  %1050 = vmatprep.subr.bf16.mxu1 %v1089_v15  ;;  %v72_v37 = vld [vmem:[#allocation2 + $0x60] sm:$0xff]  ;;  %v73_v38 = vld [vmem:[#allocation2 + $0x68] sm:$0xff]  ;;  %v97_v39 = vpack.c.bf16 %v71_v36, %v70_v35  ;;  %v74_v41 = vld [vmem:[#allocation2 + $0x70] sm:$0xff] }
  0x43   :  { %v98_v40 = vpack.c.bf16 %v73_v38, %v72_v37  ;;  %v75_v42 = vld [vmem:[#allocation2 + $0x78] sm:$0xff]  ;;  %v76_v43 = vld [vmem:[#allocation2 + $0x80] sm:$0xff]  ;;  %v77_v44 = vld [vmem:[#allocation2 + $0x88] sm:$0xff] }
  0x44   :  { %v99_v45 = vpack.c.bf16 %v75_v42, %v74_v41  ;;  %v100_v46 = vpack.c.bf16 %v77_v44, %v76_v43  ;;  %v78_v47 = vld [vmem:[#allocation2 + $0x90] sm:$0xff]  ;;  %v79_v48 = vld [vmem:[#allocation2 + $0x98] sm:$0xff]  ;;  %v80_v49 = vld [vmem:[#allocation2 + $0xa0] sm:$0xff] }
  0x45   :  { %1007 = vmatpush3.bf16.msra.mxu0 %v1076_v3  ;;  %1058 = vmatpush1.bf16.msra.mxu1 %v1087_v20  ;;  %v81_v50 = vld [vmem:[#allocation2 + $0xa8] sm:$0xff]  ;;  %v101_v51 = vpack.c.bf16 %v79_v48, %v78_v47  ;;  %v82_v53 = vld [vmem:[#allocation2 + $0xb0] sm:$0xff]  ;;  %v83_v54 = vld [vmem:[#allocation2 + $0xb8] sm:$0xff] }
  0x46   :  { %1008 = vmatprep.subr.bf16.mxu0 %v1077_v7  ;;  %1051 = vmatprep.subr.bf16.mxu1 %v1092_v21  ;;  %v102_v52 = vpack.c.bf16 %v81_v50, %v80_v49  ;;  %v84_v55 = vld [vmem:[#allocation2 + $0xc0] sm:$0xff]  ;;  %v85_v56 = vld [vmem:[#allocation2 + $0xc8] sm:$0xff]  ;;  %v103_v57 = vpack.c.bf16 %v83_v54, %v82_v53  ;;  %v86_v59 = vld [vmem:[#allocation2 + $0xd0] sm:$0xff] }
  0x47   :  { %v104_v58 = vpack.c.bf16 %v85_v56, %v84_v55  ;;  %v87_v60 = vld [vmem:[#allocation2 + $0xd8] sm:$0xff]  ;;  %v88_v61 = vld [vmem:[#allocation2 + $0xe0] sm:$0xff]  ;;  %v89_v62 = vld [vmem:[#allocation2 + $0xe8] sm:$0xff] }
  0x48   :  { %v105_v63 = vpack.c.bf16 %v87_v60, %v86_v59  ;;  %v106_v0 = vpack.c.bf16 %v89_v62, %v88_v61  ;;  %v90_v1 = vld [vmem:[#allocation2 + $0xf0] sm:$0xff]  ;;  %v91_v2 = vld [vmem:[#allocation2 + $0xf8] sm:$0xff]  ;;  %v1101_v4 = vld [vmem:[#allocation7 + $0x64] ss:$8 sps:$4 sm:$0xff]  }
  0x49   :  { %1009 = vmatpush3.bf16.msra.mxu0 %v1077_v7  ;;  %1059 = vmatpush1.bf16.msra.mxu1 %v1090_v24  ;;  %v107_v3 = vpack.c.bf16 %v91_v2, %v90_v1  ;;  %v1099_v5 = vld [vmem:[#allocation7 + $0x60] ss:$8 sps:$4 sm:$0xff]   ;;  %v1104_v6 = vld [vmem:[#allocation7 + $0x74] ss:$8 sps:$4 sm:$0xff]   ;;  %v1102_v7 = vld [vmem:[#allocation7 + $0x70] ss:$8 sps:$4 sm:$0xff]  }
  0x4a   :  { %1010 = vmatprep.subr.bf16.mxu0 %v1078_v8  ;;  %1052 = vmatprep.subr.bf16.mxu1 %v1095_v25 }
  0x4d   :  { %1011 = vmatpush3.bf16.msra.mxu0 %v1078_v8  ;;  %1060 = vmatpush1.bf16.msra.mxu1 %v1093_v30  ;;  %v1206_v8 = vmov 0  }
  0x4e   :  { %1012 = vmatprep.subr.bf16.mxu0 %v1079_v9  ;;  %1053 = vmatprep.subr.bf16.mxu1 %v1098_v31 }
  0x4f   :  { %524 = vmatprep.mubr.bf16.mxu1 %v1206_v8 }
  0x51   :  { %1013 = vmatpush3.bf16.msra.mxu0 %v1079_v9  ;;  %1061 = vmatpush1.bf16.msra.mxu1 %v1096_v34 }
  0x52   :  { %1014 = vmatprep.subr.bf16.mxu0 %v1080_v13  ;;  %1054 = vmatprep.subr.bf16.mxu1 %v1101_v4 }
  0x55   :  { %1015 = vmatpush3.bf16.msra.mxu0 %v1080_v13  ;;  %1062 = vmatpush1.bf16.msra.mxu1 %v1099_v5 }
  0x56   :  { %452 = vmatprep.subr.bf16.mxu0 %v1083_v10  ;;  %1055 = vmatprep.subr.bf16.mxu1 %v1104_v6  ;;  %v1280_v10 = vld [vmem:[%s1345_s2] ss:$0 sm:$0xff]  ;;  %s1207_s2 = smov [#allocation8]  }
  0x57   :  { %s874_s28 = sshll.u32 %s1207_s2, 4  ;;  %s875_s28 = int_to_ptr.vmem [resolvable:$true] %s874_s28 }
  0x58   :  { %1017 = vmatmul.mubr.bf16.vlgmr.msra.gmra.mrb[0].mxu0 %v93_v22  ;;  %s1171_s29 = scalar_lea.vmem %s875_s28, 4096  ;;  %p1176_p11 = scmp.lt.s32.totalorder %s875_s28, %s875_s28 }
  0x59   :  { %1020 = vmatprep.mubr.bf16.mxu0 %v94_v23  ;;  %453 = vmatpush1.bf16.msra.mxu0 %v1081_v11  ;;  %p1172_p10 = scmp.ne.s32.totalorder %s875_s28, %s1171_s29  ;;  %p1177_p12 = scmp.lt.s32.totalorder %s1171_s29, %s1171_s29 }
  0x5a   :  { %454 = vmatprep.subr.bf16.mxu0 %v1086_v12  ;;  %1063 = vmatpush1.bf16.msra.mxu1 %v1102_v7 }
  0x5b   :  { %p1178_p13 = por %p1177_p12, %p1176_p11 }
  0x5d   :  { %455 = vmatpush1.bf16.msra.mxu0 %v1084_v14  ;;  %p1179_p0 = pnand %p1178_p13, %p1172_p10 }
  0x5e   :  { %456 = vmatprep.subr.bf16.mxu0 %v1089_v15 }
  0x60   :  { %1021 = vmatmul.mubr.bf16.gmra.mrb[4].mxu0 %v95_v32 }
  0x61   :  { %1024 = vmatprep.mubr.bf16.mxu0 %v96_v33  ;;  %457 = vmatpush1.bf16.msra.mxu0 %v1087_v20 }
  0x62   :  { %458 = vmatprep.subr.bf16.mxu0 %v1092_v21 }
  0x65   :  { %459 = vmatpush1.bf16.msra.mxu0 %v1090_v24 }
  0x66   :  { %460 = vmatprep.subr.bf16.mxu0 %v1095_v25 }
  0x68   :  { %1025 = vmatmul.mubr.bf16.gmra.mrb[8].mxu0 %v97_v39 }
  0x69   :  { %1028 = vmatprep.mubr.bf16.mxu0 %v98_v40  ;;  %461 = vmatpush1.bf16.msra.mxu0 %v1093_v30 }
  0x6a   :  { %462 = vmatprep.subr.bf16.mxu0 %v1098_v31 }
  0x6d   :  { %463 = vmatpush1.bf16.msra.mxu0 %v1096_v34 }
  0x6e   :  { %464 = vmatprep.subr.bf16.mxu0 %v1101_v4 }
  0x70   :  { %1029 = vmatmul.mubr.bf16.gmra.mrb[12].mxu0 %v99_v45 }
  0x71   :  { %1032 = vmatprep.mubr.bf16.mxu0 %v100_v46  ;;  %465 = vmatpush1.bf16.msra.mxu0 %v1099_v5 }
  0x72   :  { %466 = vmatprep.subr.bf16.mxu0 %v1104_v6 }
  0x75   :  { %467 = vmatpush1.bf16.msra.mxu0 %v1102_v7 }
  0x78   :  { %1033 = vmatmul.mubr.bf16.gmra.mrb[16].mxu0 %v101_v51 }
  0x79   :  { %1036 = vmatprep.mubr.bf16.mxu0 %v102_v52 }
  0x80   :  { %1037 = vmatmul.mubr.bf16.gmra.mrb[20].mxu0 %v103_v57 }
  0x81   :  { %1040 = vmatprep.mubr.bf16.mxu0 %v104_v58 }
  0x88   :  { %1041 = vmatmul.mubr.bf16.gmra.mrb[24].mxu0 %v105_v63 }
  0x89   :  { %1044 = vmatprep.mubr.bf16.mxu0 %v106_v0 }
  0x90   :  { %1045 = vmatmul.mubr.bf16.gmra.mrb[28].mxu0 %v107_v3 }
  0x91   :  { %484 = vmatprep.mubr.bf16.mxu0 %v1206_v8 }
 0x12b   :  { %v1018_v9 = vpop.f32.mrb[0].mxu0 }
 0x12c   :  { %v213_v11 = vpop.f32.mrb[1].mxu0  ;;  %v222_v13 = vadd.f32 %v1018_v9, %v1280_v10 }
 0x12d   :  { %v1019_v12 = vpop.f32.mrb[2].mxu0  ;;  %v214_v16 = vadd.f32 %v1280_v10, %v213_v11 }
 0x12e   :  { %v225_v14 = vadd.f32 %v1019_v12, %v1280_v10  ;;  %v216_v15 = vpop.f32.mrb[3].mxu0 }
 0x12f   :  { %v217_v17 = vadd.f32 %v1280_v10, %v216_v15 }
 0x130   :  { %v341_v18 = vpack.c.bf16 %v225_v14, %v222_v13 }
 0x131   :  { %v340_v19 = vpack.c.bf16 %v217_v17, %v214_v16 }
 0x133   :  { %v1022_v20 = vpop.f32.mrb[4].mxu0  ;;  %485 = vmatmul.mubr.bf16.vlgmr.msra.gmra.mrb[32].mxu0 %v340_v19 }
 0x134   :  { %v229_v21 = vpop.f32.mrb[5].mxu0  ;;  %494 = vmatprep.mubr.bf16.mxu0 %v1206_v8  ;;  %v238_v23 = vadd.f32 %v1022_v20, %v1280_v10 }
 0x135   :  { %v1023_v22 = vpop.f32.mrb[6].mxu0  ;;  %v230_v26 = vadd.f32 %v1280_v10, %v229_v21 }
 0x136   :  { %v241_v24 = vadd.f32 %v1023_v22, %v1280_v10  ;;  %v232_v25 = vpop.f32.mrb[7].mxu0 }
 0x137   :  { %v233_v27 = vadd.f32 %v1280_v10, %v232_v25 }
 0x138   :  { %v343_v28 = vpack.c.bf16 %v241_v24, %v238_v23 }
 0x139   :  { %v342_v29 = vpack.c.bf16 %v233_v27, %v230_v26 }
 0x13b   :  { %v1026_v30 = vpop.f32.mrb[8].mxu0  ;;  %495 = vmatmul.mubr.bf16.gmra.mrb[36].mxu0 %v341_v18 }
 0x13c   :  { %v245_v31 = vpop.f32.mrb[9].mxu0  ;;  %504 = vmatprep.mubr.bf16.mxu0 %v1206_v8  ;;  %v254_v33 = vadd.f32 %v1026_v30, %v1280_v10 }
 0x13d   :  { %v1027_v32 = vpop.f32.mrb[10].mxu0  ;;  %v246_v36 = vadd.f32 %v1280_v10, %v245_v31 }
 0x13e   :  { %v257_v34 = vadd.f32 %v1027_v32, %v1280_v10  ;;  %v248_v35 = vpop.f32.mrb[11].mxu0 }
 0x13f   :  { %v249_v37 = vadd.f32 %v1280_v10, %v248_v35 }
 0x140   :  { %v345_v38 = vpack.c.bf16 %v257_v34, %v254_v33 }
 0x141   :  { %v344_v39 = vpack.c.bf16 %v249_v37, %v246_v36 }
 0x143   :  { %505 = vmatmul.mubr.bf16.gmra.mrb[40].mxu0 %v342_v29  ;;  %525 = vmatmul.mubr.bf16.vlgmr.msra.gmra.mrb[0].mxu1 %v344_v39  ;;  %v1030_v40 = vpop.f32.mrb[12].mxu0 }
 0x144   :  { %v270_v41 = vadd.f32 %v1030_v40, %v1280_v10  ;;  %v261_v42 = vpop.f32.mrb[13].mxu0  ;;  %514 = vmatprep.mubr.bf16.mxu0 %v1206_v8  ;;  %534 = vmatprep.mubr.bf16.mxu1 %v1206_v8 }
 0x145   :  { %v262_v43 = vadd.f32 %v1280_v10, %v261_v42  ;;  %v1031_v44 = vpop.f32.mrb[14].mxu0 }
 0x146   :  { %v273_v45 = vadd.f32 %v1031_v44, %v1280_v10  ;;  %v264_v46 = vpop.f32.mrb[15].mxu0 }
 0x147   :  { %v265_v47 = vadd.f32 %v1280_v10, %v264_v46 }
 0x148   :  { %v347_v48 = vpack.c.bf16 %v273_v45, %v270_v41 }
 0x149   :  { %v346_v49 = vpack.c.bf16 %v265_v47, %v262_v43 }
 0x14b   :  { %515 = vmatmul.mubr.bf16.gmra.mrb[44].mxu0 %v343_v28  ;;  %535 = vmatmul.mubr.bf16.gmra.mrb[4].mxu1 %v345_v38  ;;  %v1034_v50 = vpop.f32.mrb[16].mxu0 }
 0x14c   :  { %544 = vmatprep.mubr.bf16.mxu1 %v1206_v8  ;;  %v286_v51 = vadd.f32 %v1034_v50, %v1280_v10  ;;  %v277_v52 = vpop.f32.mrb[17].mxu0 }
 0x14d   :  { %v278_v53 = vadd.f32 %v1280_v10, %v277_v52  ;;  %v1035_v54 = vpop.f32.mrb[18].mxu0 }
 0x14e   :  { %v289_v55 = vadd.f32 %v1035_v54, %v1280_v10  ;;  %v280_v56 = vpop.f32.mrb[19].mxu0 }
 0x14f   :  { %v281_v57 = vadd.f32 %v1280_v10, %v280_v56 }
 0x150   :  { %v349_v58 = vpack.c.bf16 %v289_v55, %v286_v51 }
 0x151   :  { %v348_v59 = vpack.c.bf16 %v281_v57, %v278_v53 }
 0x153   :  { %545 = vmatmul.mubr.bf16.gmra.mrb[8].mxu1 %v346_v49  ;;  %v1038_v60 = vpop.f32.mrb[20].mxu0 }
 0x154   :  { %554 = vmatprep.mubr.bf16.mxu1 %v1206_v8  ;;  %v302_v61 = vadd.f32 %v1038_v60, %v1280_v10  ;;  %v293_v62 = vpop.f32.mrb[21].mxu0 }
 0x155   :  { %v294_v63 = vadd.f32 %v1280_v10, %v293_v62  ;;  %v1039_v0 = vpop.f32.mrb[22].mxu0 }
 0x156   :  { %v305_v1 = vadd.f32 %v1039_v0, %v1280_v10  ;;  %v296_v2 = vpop.f32.mrb[23].mxu0 }
 0x157   :  { %v297_v3 = vadd.f32 %v1280_v10, %v296_v2 }
 0x158   :  { %v351_v4 = vpack.c.bf16 %v305_v1, %v302_v61 }
 0x159   :  { %v350_v5 = vpack.c.bf16 %v297_v3, %v294_v63 }
 0x15b   :  { %555 = vmatmul.mubr.bf16.gmra.mrb[12].mxu1 %v347_v48  ;;  %v1042_v6 = vpop.f32.mrb[24].mxu0 }
 0x15c   :  { %564 = vmatprep.mubr.bf16.mxu1 %v1206_v8  ;;  %v318_v7 = vadd.f32 %v1042_v6, %v1280_v10  ;;  %v309_v9 = vpop.f32.mrb[25].mxu0 }
 0x15d   :  { %v310_v11 = vadd.f32 %v1280_v10, %v309_v9  ;;  %v1043_v12 = vpop.f32.mrb[26].mxu0 }
 0x15e   :  { %v321_v13 = vadd.f32 %v1043_v12, %v1280_v10  ;;  %v312_v14 = vpop.f32.mrb[27].mxu0 }
 0x15f   :  { %v313_v15 = vadd.f32 %v1280_v10, %v312_v14 }
 0x160   :  { %v353_v16 = vpack.c.bf16 %v321_v13, %v318_v7 }
 0x161   :  { %v352_v17 = vpack.c.bf16 %v313_v15, %v310_v11 }
 0x163   :  { %565 = vmatmul.mubr.bf16.gmra.mrb[16].mxu1 %v348_v59  ;;  %v1046_v18 = vpop.f32.mrb[28].mxu0 }
 0x164   :  { %574 = vmatprep.mubr.bf16.mxu1 %v1206_v8  ;;  %v334_v19 = vadd.f32 %v1046_v18, %v1280_v10  ;;  %v325_v20 = vpop.f32.mrb[29].mxu0 }
 0x165   :  { %v326_v21 = vadd.f32 %v1280_v10, %v325_v20  ;;  %v1047_v22 = vpop.f32.mrb[30].mxu0 }
 0x166   :  { %v337_v23 = vadd.f32 %v1047_v22, %v1280_v10  ;;  %v328_v24 = vpop.f32.mrb[31].mxu0 }
 0x167   :  { %v329_v25 = vadd.f32 %v1280_v10, %v328_v24 }
 0x168   :  { %v355_v26 = vpack.c.bf16 %v337_v23, %v334_v19 }
 0x169   :  { %v354_v27 = vpack.c.bf16 %v329_v25, %v326_v21 }
 0x16b   :  { %575 = vmatmul.mubr.bf16.gmra.mrb[20].mxu1 %v349_v58 }
 0x16c   :  { %584 = vmatprep.mubr.bf16.mxu1 %v1206_v8 }
 0x173   :  { %585 = vmatmul.mubr.bf16.gmra.mrb[24].mxu1 %v350_v5 }
 0x174   :  { %594 = vmatprep.mubr.bf16.mxu1 %v1206_v8 }
 0x17b   :  { %595 = vmatmul.mubr.bf16.gmra.mrb[28].mxu1 %v351_v4 }
 0x17c   :  { %604 = vmatprep.mubr.bf16.mxu1 %v1206_v8 }
 0x183   :  { %605 = vmatmul.mubr.bf16.gmra.mrb[32].mxu1 %v352_v17 }
 0x184   :  { %614 = vmatprep.mubr.bf16.mxu1 %v1206_v8 }
 0x18b   :  { %615 = vmatmul.mubr.bf16.gmra.mrb[36].mxu1 %v353_v16 }
 0x18c   :  { %624 = vmatprep.mubr.bf16.mxu1 %v1206_v8 }
 0x193   :  { %625 = vmatmul.mubr.bf16.gmra.mrb[40].mxu1 %v354_v27 }
 0x194   :  { %634 = vmatprep.mubr.bf16.mxu1 %v1206_v8 }
 0x19b   :  { %635 = vmatmul.mubr.bf16.gmra.mrb[44].mxu1 %v355_v26 }
 0x206   :  { %v486_v10 = vpop.f32.mrb[32].mxu0 }
 0x207   :  { %v488_v28 = vpop.f32.mrb[33].mxu0 }
 0x208   :  { %v944_v29 = vpack.c.bf16 %v488_v28, %v486_v10  ;;  %v490_v30 = vpop.f32.mrb[34].mxu0 }
 0x209   :  { %v492_v31 = vpop.f32.mrb[35].mxu0 }
 0x20a   :  { %837 = vst [vmem:[#allocation8] sm:$0xff] %v944_v29  ;;  %v945_v32 = vpack.c.bf16 %v492_v31, %v490_v30 }
 0x20c   :  { %838 = vst [vmem:[#allocation8 + $0x8] sm:$0xff] %v945_v32 }
 0x20e   :  { %v496_v33 = vpop.f32.mrb[36].mxu0 }
 0x20f   :  { %v498_v34 = vpop.f32.mrb[37].mxu0 }
 0x210   :  { %v946_v35 = vpack.c.bf16 %v498_v34, %v496_v33  ;;  %v500_v36 = vpop.f32.mrb[38].mxu0 }
 0x211   :  { %v502_v37 = vpop.f32.mrb[39].mxu0 }
 0x212   :  { %839 = vst [vmem:[#allocation8 + $0x10] sm:$0xff] %v946_v35  ;;  %v947_v38 = vpack.c.bf16 %v502_v37, %v500_v36 }
 0x214   :  { %840 = vst [vmem:[#allocation8 + $0x18] sm:$0xff] %v947_v38 }
 0x216   :  { %v506_v39 = vpop.f32.mrb[40].mxu0  ;;  %v526_v40 = vpop.f32.mrb[0].mxu1 }
 0x217   :  { %v508_v8 = vpop.f32.mrb[41].mxu0  ;;  %v528_v41 = vpop.f32.mrb[1].mxu1 }
 0x218   :  { %v948_v42 = vpack.c.bf16 %v508_v8, %v506_v39  ;;  %v952_v43 = vpack.c.bf16 %v528_v41, %v526_v40  ;;  %v510_v44 = vpop.f32.mrb[42].mxu0  ;;  %v530_v45 = vpop.f32.mrb[2].mxu1 }
 0x219   :  { %v512_v46 = vpop.f32.mrb[43].mxu0  ;;  %v532_v47 = vpop.f32.mrb[3].mxu1 }
 0x21a   :  { %841 = vst [vmem:[#allocation8 + $0x20] sm:$0xff] %v948_v42  ;;  %845 = vst [vmem:[#allocation8 + $0x40] sm:$0xff] %v952_v43  ;;  %v949_v48 = vpack.c.bf16 %v512_v46, %v510_v44  ;;  %v953_v49 = vpack.c.bf16 %v532_v47, %v530_v45 }
 0x21c   :  { %842 = vst [vmem:[#allocation8 + $0x28] sm:$0xff] %v949_v48  ;;  %846 = vst [vmem:[#allocation8 + $0x48] sm:$0xff] %v953_v49 }
 0x21e   :  { %v516_v50 = vpop.f32.mrb[44].mxu0  ;;  %v536_v51 = vpop.f32.mrb[4].mxu1 }
 0x21f   :  { %v518_v52 = vpop.f32.mrb[45].mxu0  ;;  %v538_v53 = vpop.f32.mrb[5].mxu1 }
 0x220   :  { %v950_v54 = vpack.c.bf16 %v518_v52, %v516_v50  ;;  %v954_v55 = vpack.c.bf16 %v538_v53, %v536_v51  ;;  %v520_v56 = vpop.f32.mrb[46].mxu0  ;;  %v540_v57 = vpop.f32.mrb[6].mxu1 }
 0x221   :  { %v522_v58 = vpop.f32.mrb[47].mxu0  ;;  %v542_v59 = vpop.f32.mrb[7].mxu1 }
 0x222   :  { %843 = vst [vmem:[#allocation8 + $0x30] sm:$0xff] %v950_v54  ;;  %847 = vst [vmem:[#allocation8 + $0x50] sm:$0xff] %v954_v55  ;;  %v951_v60 = vpack.c.bf16 %v522_v58, %v520_v56  ;;  %v955_v61 = vpack.c.bf16 %v542_v59, %v540_v57 }
 0x224   :  { %844 = vst [vmem:[#allocation8 + $0x38] sm:$0xff] %v951_v60  ;;  %848 = vst [vmem:[#allocation8 + $0x58] sm:$0xff] %v955_v61 }
 0x226   :  { %v546_v62 = vpop.f32.mrb[8].mxu1 }
 0x227   :  { %v548_v63 = vpop.f32.mrb[9].mxu1 }
 0x228   :  { %v956_v0 = vpack.c.bf16 %v548_v63, %v546_v62  ;;  %v550_v1 = vpop.f32.mrb[10].mxu1 }
 0x229   :  { %v552_v2 = vpop.f32.mrb[11].mxu1 }
 0x22a   :  { %849 = vst [vmem:[#allocation8 + $0x60] sm:$0xff] %v956_v0  ;;  %v957_v3 = vpack.c.bf16 %v552_v2, %v550_v1 }
 0x22c   :  { %850 = vst [vmem:[#allocation8 + $0x68] sm:$0xff] %v957_v3 }
 0x22e   :  { %v556_v4 = vpop.f32.mrb[12].mxu1 }
 0x22f   :  { %v558_v5 = vpop.f32.mrb[13].mxu1 }
 0x230   :  { %v958_v6 = vpack.c.bf16 %v558_v5, %v556_v4  ;;  %v560_v7 = vpop.f32.mrb[14].mxu1 }
 0x231   :  { %v562_v9 = vpop.f32.mrb[15].mxu1 }
 0x232   :  { %851 = vst [vmem:[#allocation8 + $0x70] sm:$0xff] %v958_v6  ;;  %v959_v11 = vpack.c.bf16 %v562_v9, %v560_v7 }
 0x234   :  { %852 = vst [vmem:[#allocation8 + $0x78] sm:$0xff] %v959_v11 }
 0x236   :  { %v566_v12 = vpop.f32.mrb[16].mxu1 }
 0x237   :  { %v568_v13 = vpop.f32.mrb[17].mxu1 }
 0x238   :  { %v960_v14 = vpack.c.bf16 %v568_v13, %v566_v12  ;;  %v570_v15 = vpop.f32.mrb[18].mxu1 }
 0x239   :  { %v572_v16 = vpop.f32.mrb[19].mxu1 }
 0x23a   :  { %853 = vst [vmem:[#allocation8 + $0x80] sm:$0xff] %v960_v14  ;;  %v961_v17 = vpack.c.bf16 %v572_v16, %v570_v15 }
 0x23c   :  { %854 = vst [vmem:[#allocation8 + $0x88] sm:$0xff] %v961_v17 }
 0x23e   :  { %v576_v18 = vpop.f32.mrb[20].mxu1 }
 0x23f   :  { %v578_v19 = vpop.f32.mrb[21].mxu1 }
 0x240   :  { %v962_v20 = vpack.c.bf16 %v578_v19, %v576_v18  ;;  %v580_v21 = vpop.f32.mrb[22].mxu1 }
 0x241   :  { %v582_v22 = vpop.f32.mrb[23].mxu1 }
 0x242   :  { %855 = vst [vmem:[#allocation8 + $0x90] sm:$0xff] %v962_v20  ;;  %v963_v23 = vpack.c.bf16 %v582_v22, %v580_v21 }
 0x244   :  { %856 = vst [vmem:[#allocation8 + $0x98] sm:$0xff] %v963_v23 }
 0x246   :  { %v586_v24 = vpop.f32.mrb[24].mxu1 }
 0x247   :  { %v588_v25 = vpop.f32.mrb[25].mxu1 }
 0x248   :  { %v964_v26 = vpack.c.bf16 %v588_v25, %v586_v24  ;;  %v590_v27 = vpop.f32.mrb[26].mxu1 }
 0x249   :  { %v592_v10 = vpop.f32.mrb[27].mxu1 }
 0x24a   :  { %857 = vst [vmem:[#allocation8 + $0xa0] sm:$0xff] %v964_v26  ;;  %v965_v28 = vpack.c.bf16 %v592_v10, %v590_v27 }
 0x24c   :  { %858 = vst [vmem:[#allocation8 + $0xa8] sm:$0xff] %v965_v28 }
 0x24e   :  { %v596_v29 = vpop.f32.mrb[28].mxu1 }
 0x24f   :  { %v598_v30 = vpop.f32.mrb[29].mxu1 }
 0x250   :  { %v966_v31 = vpack.c.bf16 %v598_v30, %v596_v29  ;;  %v600_v32 = vpop.f32.mrb[30].mxu1 }
 0x251   :  { %v602_v33 = vpop.f32.mrb[31].mxu1 }
 0x252   :  { %859 = vst [vmem:[#allocation8 + $0xb0] sm:$0xff] %v966_v31  ;;  %v967_v34 = vpack.c.bf16 %v602_v33, %v600_v32 }
 0x254   :  { %860 = vst [vmem:[#allocation8 + $0xb8] sm:$0xff] %v967_v34 }
 0x256   :  { %v606_v35 = vpop.f32.mrb[32].mxu1 }
 0x257   :  { %v608_v36 = vpop.f32.mrb[33].mxu1 }
 0x258   :  { %v968_v37 = vpack.c.bf16 %v608_v36, %v606_v35  ;;  %v610_v38 = vpop.f32.mrb[34].mxu1 }
 0x259   :  { %v612_v39 = vpop.f32.mrb[35].mxu1 }
 0x25a   :  { %861 = vst [vmem:[#allocation8 + $0xc0] sm:$0xff] %v968_v37  ;;  %v969_v40 = vpack.c.bf16 %v612_v39, %v610_v38 }
 0x25c   :  { %862 = vst [vmem:[#allocation8 + $0xc8] sm:$0xff] %v969_v40 }
 0x25e   :  { %v616_v8 = vpop.f32.mrb[36].mxu1 }
 0x25f   :  { %v618_v41 = vpop.f32.mrb[37].mxu1 }
 0x260   :  { %v970_v42 = vpack.c.bf16 %v618_v41, %v616_v8  ;;  %v620_v43 = vpop.f32.mrb[38].mxu1 }
 0x261   :  { %v622_v44 = vpop.f32.mrb[39].mxu1 }
 0x262   :  { %863 = vst [vmem:[#allocation8 + $0xd0] sm:$0xff] %v970_v42  ;;  %v971_v45 = vpack.c.bf16 %v622_v44, %v620_v43 }
 0x264   :  { %864 = vst [vmem:[#allocation8 + $0xd8] sm:$0xff] %v971_v45 }
 0x266   :  { %v626_v46 = vpop.f32.mrb[40].mxu1 }
 0x267   :  { %v628_v47 = vpop.f32.mrb[41].mxu1 }
 0x268   :  { %v972_v48 = vpack.c.bf16 %v628_v47, %v626_v46  ;;  %v630_v49 = vpop.f32.mrb[42].mxu1 }
 0x269   :  { %v632_v50 = vpop.f32.mrb[43].mxu1 }
 0x26a   :  { %865 = vst [vmem:[#allocation8 + $0xe0] sm:$0xff] %v972_v48  ;;  %v973_v51 = vpack.c.bf16 %v632_v50, %v630_v49 }
 0x26c   :  { %866 = vst [vmem:[#allocation8 + $0xe8] sm:$0xff] %v973_v51 }
 0x26e   :  { %v636_v52 = vpop.f32.mrb[44].mxu1 }
 0x26f   :  { %v638_v53 = vpop.f32.mrb[45].mxu1 }
 0x270   :  { %v974_v54 = vpack.c.bf16 %v638_v53, %v636_v52  ;;  %v640_v55 = vpop.f32.mrb[46].mxu1 }
 0x271   :  { %v642_v56 = vpop.f32.mrb[47].mxu1 }
 0x272   :  { %867 = vst [vmem:[#allocation8 + $0xf0] sm:$0xff] %v974_v54  ;;  %v975_v57 = vpack.c.bf16 %v642_v56, %v640_v55 }
 0x274   :  { %868 = vst [vmem:[#allocation8 + $0xf8] sm:$0xff] %v975_v57 }
 0x275   :  { %1182 = shalt.err (!%p1179_p0)
}
 0x276   :  { %s1183_s6 = scalar_lea.hbm %s1347_s4, 4096 }
 0x277   :  { %p1184_p1 = scmp.ne.s32.totalorder %s1347_s4, %s1183_s6  ;;  %p1187_p2 = scmp.lt.u32.totalorder %s1183_s6, %s1347_s4 }
 0x279   :  { %p1189_p3 = pnand %p1187_p2, %p1184_p1 }
 0x27b   :  { %1192 = shalt.err (!%p1189_p3)
}
 0x27c   :  { %880 = dma.vmem_to_hbm [thread:$0]  %s875_s28, 4096, %s1347_s4, [#allocation4], %s1203_s1, %s1203_s1, %s1204_s13  }
 0x27d   :  { %1197 = dma.done.wait [#allocation4], 4096  }
 0x27e   :  { %1198 = vsyncadd [#allocation4], 4294963200 }
 0x27f   :  { %884 = vsyncpa [#allocation3], 1 }
 0x280   :  { %885 = vsyncpa [#allocation6], 1 }
 0x281   :  { %886 = vsyncpa [#allocation4], 1 }

</bundles_post_ra>
